<compile_context>
chip_gen: v7x
topology: tpu7x:2x2x1
jax: 0.10.0
libtpu: 0.0.40
codegen_flags: <defaults>
</compile_context>

<pallas_src>
import functools

import jax
import jax.numpy as jnp
import numpy as np
from jax import lax
from jax.experimental import pallas as pl
from jax.experimental.pallas import tpu as pltpu

EPS = 1e-5
_LANES = 128


# ---------------------------------------------------------------------------
# sizing helpers
# ---------------------------------------------------------------------------
def _round_up(x, m):
    return ((x + m - 1) // m) * m


def _padded_bytes(lead, sub, lane, dtype):
    """VMEM bytes of one (lead, sub, lane) tile after (sublane, lane) padding."""
    it = jnp.dtype(dtype).itemsize
    sub_tile = 8 * max(1, 4 // it)  # f32 -> 8, bf16 -> 16, int8 -> 32
    return lead * _round_up(max(sub, 1), sub_tile) * _round_up(max(lane, 1), _LANES) * it


def _device_info():
    """Per-generation (vmem_limit_bytes, usable-for-blocks bytes, two_cores)."""
    kind = ""
    try:
        kind = jax.devices()[0].device_kind.lower()
    except Exception:
        pass
    if "v6" in kind:                              # 128 MiB physical VMEM, ~1.4 TB/s HBM
        limit, usable = 96 << 20, 64 << 20
    elif "v5 lite" in kind or "v5e" in kind:      # 128 MiB physical, ~0.8 TB/s HBM
        limit, usable = 64 << 20, 40 << 20
    else:                                         # v7x has only 64 MiB physical; stay safe
        limit, usable = 48 << 20, 32 << 20
    two_cores = ("v7" in kind) or ("v4" in kind) or ("v5p" in kind)
    return limit, usable, two_cores


def _pick_batch_block(B, sub, lane, dtype, usable_vmem, two_cores):
    """Largest divisor of B whose *padded* working set fits the VMEM budget."""
    per_b = (2 * _padded_bytes(1, sub, lane, dtype)            # double-buffered input
             + 2 * _padded_bytes(1, sub, lane, dtype)          # double-buffered output
             + 2 * _padded_bytes(1, sub, lane, jnp.float32))   # in-kernel f32 temporaries
    cap = max(1, int(usable_vmem // per_b))
    if two_cores and B >= 2:
        cap = min(cap, B // 2)  # keep >= 2 grid steps so both TensorCores get work
    cap = min(cap, B)
    tb = 1
    for d in range(1, cap + 1):
        if B % d == 0:
            tb = d
    # TODO(synk): for prime/awkward B this degrades to tb=1; a remainder grid or an
    # N-splitting accumulator pass would keep tiles large in that case.
    return tb


# ---------------------------------------------------------------------------
# lane-dense fast path (V | 128 and (N*V) % 128 == 0)
# ---------------------------------------------------------------------------
def _group_sum_lanes(t, v):
    """Sum lanes sharing the same (lane % v) and broadcast the total back to every
    lane of the group.  Requires v | 128.  Log-step roll-add (XLU, cheap)."""
    step = v
    while step < _LANES:
        t = t + pltpu.roll(t, shift=step, axis=1)
        step *= 2
    return t


def _fwd_kernel_lane_dense(x_ref, gmul_ref, beta_ref, out_ref, mean_ref, var_ref, *, v, n):
    # x_ref/out_ref: (tb, C, 128) -- the (N, V) plane flattened so lanes are dense.
    # gmul_ref/beta_ref: (1, 128) per-variate params tiled to the lane pattern.
    # mean_ref/var_ref: (tb, 1, 128) per-variate stats in the same lane pattern.
    x = x_ref[...].astype(jnp.float32)

    # Per-variate reference (first time step), broadcast to every lane of its group:
    # keeps the one-pass sum / sum-of-squares variance numerically stable.
    lane = lax.broadcasted_iota(jnp.int32, (1, _LANES), 1)
    base = _group_sum_lanes(jnp.where(lane < v, x[:, 0, :], 0.0), v)   # x[b, 0, lane % v]

    d = x - base[:, None, :]
    s1 = _group_sum_lanes(jnp.sum(d, axis=1), v) * (1.0 / n)           # E[x - base]
    s2 = _group_sum_lanes(jnp.sum(d * d, axis=1), v) * (1.0 / n)       # E[(x - base)^2]
    mean = base + s1
    var = s2 - s1 * s1                                                 # unbiased=False

    inv_std = lax.rsqrt(jnp.maximum(var, EPS))                         # clamp(min=eps).rsqrt()
    scale = inv_std * gmul_ref[...]                                    # (tb, 128)
    offset = beta_ref[...] - mean * scale
    out_ref[...] = (x * scale[:, None, :] + offset[:, None, :]).astype(out_ref.dtype)
    mean_ref[...] = mean[:, None, :]
    var_ref[...] = var[:, None, :]


def _rev_kernel_lane_dense(y_ref, ginv_ref, beta_ref, mean_ref, var_ref, out_ref):
    y = y_ref[...].astype(jnp.float32)                  # (tb, C, 128)
    std = jnp.sqrt(var_ref[...])                        # raw var, as in PyTorch reverse
    scale = std * ginv_ref[...][None]                   # (tb, 1, 128)
    offset = mean_ref[...] - beta_ref[...][None] * scale
    out_ref[...] = (y * scale + offset).astype(out_ref.dtype)


# ---------------------------------------------------------------------------
# fallback path (general V): V on lanes, still single-pass stats
# ---------------------------------------------------------------------------
def _fwd_kernel_nv(x_ref, gamma_ref, beta_ref, out_ref, mean_ref, var_ref, *, n):
    # x_ref: (tb, N, V); gamma/beta: (1, V); mean/var: (tb, 1, V).
    x = x_ref[...].astype(jnp.float32)
    base = x[:, :1, :]
    d = x - base
    s1 = jnp.sum(d, axis=1, keepdims=True) * (1.0 / n)
    s2 = jnp.sum(d * d, axis=1, keepdims=True) * (1.0 / n)
    mean = base + s1
    var = s2 - s1 * s1
    inv_std = lax.rsqrt(jnp.maximum(var, EPS))
    scale = inv_std * gamma_ref[...][None]
    offset = beta_ref[...][None] - mean * scale
    out_ref[...] = (x * scale + offset).astype(out_ref.dtype)
    mean_ref[...] = mean
    var_ref[...] = var


def _rev_kernel_nv(y_ref, ginv_ref, beta_ref, mean_ref, var_ref, out_ref):
    y = y_ref[...].astype(jnp.float32)
    std = jnp.sqrt(var_ref[...])
    scale = std * ginv_ref[...][None]
    offset = mean_ref[...] - beta_ref[...][None] * scale
    out_ref[...] = (y * scale + offset).astype(out_ref.dtype)


# ---------------------------------------------------------------------------
# wrapper
# ---------------------------------------------------------------------------
def revin_forward(x_bnv, gamma, beta, eps=EPS):
    """RevIN forward.  x_bnv: (B, N, V); gamma/beta: (V, 1) as in the PyTorch module.
    Returns (rescaled (B, N, V), reverse_fn)."""
    B, N, V = x_bnv.shape
    assert gamma.shape == (V, 1) and beta.shape == (V, 1)

    vmem_limit, usable, two_cores = _device_info()
    cparams = pltpu.CompilerParams(dimension_semantics=("parallel",),
                                   vmem_limit_bytes=vmem_limit)

    gamma_row = gamma.reshape(1, V).astype(jnp.float32)
    beta_row = beta.reshape(1, V).astype(jnp.float32)
    # Hoisted out of the reverse kernel: sign(g) * max(|g|, eps); guard g == 0
    # (PyTorch would give inf there).
    clamped = jnp.sign(gamma_row) * jnp.maximum(jnp.abs(gamma_row), eps)
    clamped = jnp.where(clamped == 0.0, eps, clamped)
    ginv_row = 1.0 / clamped

    lane_dense = (V <= _LANES) and (_LANES % V == 0) and ((N * V) % _LANES == 0)

    if lane_dense:
        C = (N * V) // _LANES
        reps = _LANES // V
        gmul_pat = jnp.tile(gamma_row, (1, reps))   # gamma[lane % V], (1, 128)
        beta_pat = jnp.tile(beta_row, (1, reps))
        ginv_pat = jnp.tile(ginv_row, (1, reps))
        x3 = x_bnv.reshape(B, C, _LANES)            # free: contiguous collapse of (N, V)

        tb = _pick_batch_block(B, C, _LANES, x_bnv.dtype, usable, two_cores)
        grid = (B // tb,)

        out3, mean_p, var_p = pl.pallas_call(
            functools.partial(_fwd_kernel_lane_dense, v=V, n=N),
            grid=grid,
            in_specs=[
                pl.BlockSpec((tb, C, _LANES), lambda b: (b, 0, 0)),
                pl.BlockSpec((1, _LANES), lambda b: (0, 0)),
                pl.BlockSpec((1, _LANES), lambda b: (0, 0)),
            ],
            out_specs=[
                pl.BlockSpec((tb, C, _LANES), lambda b: (b, 0, 0)),
                pl.BlockSpec((tb, 1, _LANES), lambda b: (b, 0, 0)),
                pl.BlockSpec((tb, 1, _LANES), lambda b: (b, 0, 0)),
            ],
            out_shape=(
                jax.ShapeDtypeStruct((B, C, _LANES), x_bnv.dtype),
                jax.ShapeDtypeStruct((B, 1, _LANES), jnp.float32),
                jax.ShapeDtypeStruct((B, 1, _LANES), jnp.float32),
            ),
            compiler_params=cparams,
        )(x3, gmul_pat, beta_pat)
        rescaled = out3.reshape(B, N, V)

        def reverse_fn(scaled_output_bnv):
            # TODO(synk): PyTorch reverse uses unclamped sqrt(var); variates with
            # var < eps will not round-trip exactly (kept for parity).
            y3 = scaled_output_bnv.reshape(B, C, _LANES)
            out = pl.pallas_call(
                _rev_kernel_lane_dense,
                grid=grid,
                in_specs=[
                    pl.BlockSpec((tb, C, _LANES), lambda b: (b, 0, 0)),
                    pl.BlockSpec((1, _LANES), lambda b: (0, 0)),
                    pl.BlockSpec((1, _LANES), lambda b: (0, 0)),
                    pl.BlockSpec((tb, 1, _LANES), lambda b: (b, 0, 0)),
                    pl.BlockSpec((tb, 1, _LANES), lambda b: (b, 0, 0)),
                ],
                out_specs=pl.BlockSpec((tb, C, _LANES), lambda b: (b, 0, 0)),
                out_shape=jax.ShapeDtypeStruct((B, C, _LANES), scaled_output_bnv.dtype),
                compiler_params=cparams,
            )(y3, ginv_pat, beta_pat, mean_p, var_p)
            return out.reshape(B, N, V)

        return rescaled, reverse_fn

    # ----- fallback: general (N, V); still single-pass stats + fused mul-add -----
    # TODO(synk): add an N-splitting accumulator grid for sequences so long that even
    # tb=1 exceeds the VMEM budget (mainly a v7x 64 MiB concern).
    tb = _pick_batch_block(B, N, V, x_bnv.dtype, usable, two_cores)
    grid = (B // tb,)

    rescaled, mean_p, var_p = pl.pallas_call(
        functools.partial(_fwd_kernel_nv, n=N),
        grid=grid,
        in_specs=[
            pl.BlockSpec((tb, N, V), lambda b: (b, 0, 0)),
            pl.BlockSpec((1, V), lambda b: (0, 0)),
            pl.BlockSpec((1, V), lambda b: (0, 0)),
        ],
        out_specs=[
            pl.BlockSpec((tb, N, V), lambda b: (b, 0, 0)),
            pl.BlockSpec((tb, 1, V), lambda b: (b, 0, 0)),
            pl.BlockSpec((tb, 1, V), lambda b: (b, 0, 0)),
        ],
        out_shape=(
            jax.ShapeDtypeStruct((B, N, V), x_bnv.dtype),
            jax.ShapeDtypeStruct((B, 1, V), jnp.float32),
            jax.ShapeDtypeStruct((B, 1, V), jnp.float32),
        ),
        compiler_params=cparams,
    )(x_bnv, gamma_row, beta_row)

    def reverse_fn(scaled_output_bnv):
        return pl.pallas_call(
            _rev_kernel_nv,
            grid=grid,
            in_specs=[
                pl.BlockSpec((tb, N, V), lambda b: (b, 0, 0)),
                pl.BlockSpec((1, V), lambda b: (0, 0)),
                pl.BlockSpec((1, V), lambda b: (0, 0)),
                pl.BlockSpec((tb, 1, V), lambda b: (b, 0, 0)),
                pl.BlockSpec((tb, 1, V), lambda b: (b, 0, 0)),
            ],
            out_specs=pl.BlockSpec((tb, N, V), lambda b: (b, 0, 0)),
            out_shape=jax.ShapeDtypeStruct((B, N, V), scaled_output_bnv.dtype),
            compiler_params=cparams,
        )(scaled_output_bnv, ginv_row, beta_row, mean_p, var_p)

    return rescaled, reverse_fn


# ---------------------------------------------------------------------------
# reference + demo
# ---------------------------------------------------------------------------
def _reference_forward(x_bnv, gamma, beta, eps=EPS):
    x = jnp.transpose(x_bnv, (0, 2, 1))                        # (B, V, N)
    mean = jnp.mean(x, axis=-1, keepdims=True)
    var = jnp.mean((x - mean) ** 2, axis=-1, keepdims=True)
    inv = lax.rsqrt(jnp.maximum(var, eps))
    out = (x - mean) * inv * gamma + beta
    return jnp.transpose(out, (0, 2, 1))


if __name__ == "__main__":
    key = jax.random.PRNGKey(0)
    kx, kg, kb, kx2 = jax.random.split(key, 4)

    # 1) Lane-dense fast path (V | 128 and N*V % 128 == 0), default params.
    B, N, V = 4, 32, 8
    x = jax.random.normal(kx, (B, N, V), dtype=jnp.float32)
    gamma = jnp.ones((V, 1), jnp.float32)   # default nn.Parameter init
    beta = jnp.zeros((V, 1), jnp.float32)
    rescaled, reverse_fn = revin_forward(x, gamma, beta)
    reconstructed = reverse_fn(rescaled)
    jax.block_until_ready((rescaled, reconstructed))
    np.testing.assert_allclose(np.asarray(rescaled),
                               np.asarray(_reference_forward(x, gamma, beta)),
                               rtol=1e-5, atol=1e-5)
    np.testing.assert_allclose(np.asarray(reconstructed), np.asarray(x),
                               rtol=1e-4, atol=1e-4)

    # 2) Same path with non-trivial gamma/beta (kept away from 0).
    gamma2 = (0.5 + 0.5 * jax.random.uniform(kg, (V, 1))).astype(jnp.float32)
    beta2 = (0.1 * jax.random.normal(kb, (V, 1))).astype(jnp.float32)
    rescaled2, reverse_fn2 = revin_forward(x, gamma2, beta2)
    reconstructed2 = reverse_fn2(rescaled2)
    jax.block_until_ready((rescaled2, reconstructed2))
    np.testing.assert_allclose(np.asarray(rescaled2),
                               np.asarray(_reference_forward(x, gamma2, beta2)),
                               rtol=1e-5, atol=1e-5)
    np.testing.assert_allclose(np.asarray(reconstructed2), np.asarray(x),
                               rtol=1e-4, atol=1e-4)

    # 3) Fallback path: V does not divide 128.
    B3, N3, V3 = 2, 12, 5
    x3 = jax.random.normal(kx2, (B3, N3, V3), dtype=jnp.float32)
    gamma3 = jnp.ones((V3, 1), jnp.float32)
    beta3 = jnp.zeros((V3, 1), jnp.float32)
    rescaled3, reverse_fn3 = revin_forward(x3, gamma3, beta3)
    reconstructed3 = reverse_fn3(rescaled3)
    jax.block_until_ready((rescaled3, reconstructed3))
    np.testing.assert_allclose(np.asarray(rescaled3),
                               np.asarray(_reference_forward(x3, gamma3, beta3)),
                               rtol=1e-5, atol=1e-5)
    np.testing.assert_allclose(np.asarray(reconstructed3), np.asarray(x3),
                               rtol=1e-4, atol=1e-4)

    print("KERNEL_OK")
</pallas_src>

<mosaic_0001>
module attributes {stable_mosaic.version = 11 : i64} {
  func.func @_fwd_kernel_lane_dense(%arg0: i32, %arg1: memref<4x2x128xf32, #tpu.memory_space<vmem>>, %arg2: memref<1x128xf32, #tpu.memory_space<vmem>>, %arg3: memref<1x128xf32, #tpu.memory_space<vmem>>, %arg4: memref<4x2x128xf32, #tpu.memory_space<vmem>>, %arg5: memref<4x1x128xf32, #tpu.memory_space<vmem>>, %arg6: memref<4x1x128xf32, #tpu.memory_space<vmem>>) attributes {dimension_semantics = [#tpu.dimension_semantics<parallel>], iteration_bounds = array<i64: 1>, scalar_prefetch = 0 : i64, scratch_operands = 0 : i64, tpu.core_type = #tpu.core_type<tc>, window_params = [{transform_indices = @transform_0, window_bounds = array<i64: 4, 2, 128>}, {pipeline_mode = #tpu.pipeline_mode<synchronous>, transform_indices = @transform_1, window_bounds = array<i64: 1, 128>}, {pipeline_mode = #tpu.pipeline_mode<synchronous>, transform_indices = @transform_2, window_bounds = array<i64: 1, 128>}, {transform_indices = @transform_3, window_bounds = array<i64: 4, 2, 128>}, {transform_indices = @transform_4, window_bounds = array<i64: 4, 1, 128>}, {transform_indices = @transform_5, window_bounds = array<i64: 4, 1, 128>}]} {
    %c0 = arith.constant 0 : index
    %c0_0 = arith.constant 0 : index
    %c0_1 = arith.constant 0 : index
    %0 = vector.load %arg1[%c0, %c0_0, %c0_1] : memref<4x2x128xf32, #tpu.memory_space<vmem>>, vector<4x2x128xf32>
    %1 = tpu.iota {dimensions = array<i32: 1>} : vector<1x128xi32>
    %c8_i32 = arith.constant 8 : i32
    %2 = vector.broadcast %c8_i32 : i32 to vector<1x128xi32>
    %3 = arith.cmpi slt, %1, %2 : vector<1x128xi32>
    %4 = vector.extract_strided_slice %0 {offsets = [0, 0, 0], sizes = [4, 1, 128], strides = [1, 1, 1]} : vector<4x2x128xf32> to vector<4x1x128xf32>
    %5 = vector.shape_cast %4 : vector<4x1x128xf32> to vector<4x128xf32>
    %cst = arith.constant 0.000000e+00 : f32
    %6 = vector.shape_cast %3 : vector<1x128xi1> to vector<1x128xi1>
    %7 = vector.broadcast %6 : vector<1x128xi1> to vector<4x128xi1>
    %8 = vector.broadcast %cst : f32 to vector<4x128xf32>
    %9 = arith.select %7, %5, %8 : vector<4x128xi1>, vector<4x128xf32>
    %c8_i32_2 = arith.constant 8 : i32
    %10 = tpu.dynamic_rotate %9 by %c8_i32_2 dim 1 : vector<4x128xf32>, i32 -> vector<4x128xf32>
    %11 = arith.addf %9, %10 : vector<4x128xf32>
    %c16_i32 = arith.constant 16 : i32
    %12 = tpu.dynamic_rotate %11 by %c16_i32 dim 1 : vector<4x128xf32>, i32 -> vector<4x128xf32>
    %13 = arith.addf %11, %12 : vector<4x128xf32>
    %c32_i32 = arith.constant 32 : i32
    %14 = tpu.dynamic_rotate %13 by %c32_i32 dim 1 : vector<4x128xf32>, i32 -> vector<4x128xf32>
    %15 = arith.addf %13, %14 : vector<4x128xf32>
    %c64_i32 = arith.constant 64 : i32
    %16 = tpu.dynamic_rotate %15 by %c64_i32 dim 1 : vector<4x128xf32>, i32 -> vector<4x128xf32>
    %17 = arith.addf %15, %16 : vector<4x128xf32>
    %18 = vector.shape_cast %17 : vector<4x128xf32> to vector<4x1x128xf32>
    %19 = vector.broadcast %18 : vector<4x1x128xf32> to vector<4x2x128xf32>
    %20 = arith.subf %0, %19 : vector<4x2x128xf32>
    %cst_3 = arith.constant dense<0.000000e+00> : vector<4x128xf32>
    %21 = vector.multi_reduction <add>, %20, %cst_3 [1] : vector<4x2x128xf32> to vector<4x128xf32>
    %c8_i32_4 = arith.constant 8 : i32
    %22 = tpu.dynamic_rotate %21 by %c8_i32_4 dim 1 : vector<4x128xf32>, i32 -> vector<4x128xf32>
    %23 = arith.addf %21, %22 : vector<4x128xf32>
    %c16_i32_5 = arith.constant 16 : i32
    %24 = tpu.dynamic_rotate %23 by %c16_i32_5 dim 1 : vector<4x128xf32>, i32 -> vector<4x128xf32>
    %25 = arith.addf %23, %24 : vector<4x128xf32>
    %c32_i32_6 = arith.constant 32 : i32
    %26 = tpu.dynamic_rotate %25 by %c32_i32_6 dim 1 : vector<4x128xf32>, i32 -> vector<4x128xf32>
    %27 = arith.addf %25, %26 : vector<4x128xf32>
    %c64_i32_7 = arith.constant 64 : i32
    %28 = tpu.dynamic_rotate %27 by %c64_i32_7 dim 1 : vector<4x128xf32>, i32 -> vector<4x128xf32>
    %29 = arith.addf %27, %28 : vector<4x128xf32>
    %cst_8 = arith.constant 3.125000e-02 : f32
    %30 = vector.broadcast %cst_8 : f32 to vector<4x128xf32>
    %31 = arith.mulf %29, %30 : vector<4x128xf32>
    %32 = arith.mulf %20, %20 : vector<4x2x128xf32>
    %cst_9 = arith.constant dense<0.000000e+00> : vector<4x128xf32>
    %33 = vector.multi_reduction <add>, %32, %cst_9 [1] : vector<4x2x128xf32> to vector<4x128xf32>
    %c8_i32_10 = arith.constant 8 : i32
    %34 = tpu.dynamic_rotate %33 by %c8_i32_10 dim 1 : vector<4x128xf32>, i32 -> vector<4x128xf32>
    %35 = arith.addf %33, %34 : vector<4x128xf32>
    %c16_i32_11 = arith.constant 16 : i32
    %36 = tpu.dynamic_rotate %35 by %c16_i32_11 dim 1 : vector<4x128xf32>, i32 -> vector<4x128xf32>
    %37 = arith.addf %35, %36 : vector<4x128xf32>
    %c32_i32_12 = arith.constant 32 : i32
    %38 = tpu.dynamic_rotate %37 by %c32_i32_12 dim 1 : vector<4x128xf32>, i32 -> vector<4x128xf32>
    %39 = arith.addf %37, %38 : vector<4x128xf32>
    %c64_i32_13 = arith.constant 64 : i32
    %40 = tpu.dynamic_rotate %39 by %c64_i32_13 dim 1 : vector<4x128xf32>, i32 -> vector<4x128xf32>
    %41 = arith.addf %39, %40 : vector<4x128xf32>
    %cst_14 = arith.constant 3.125000e-02 : f32
    %42 = vector.broadcast %cst_14 : f32 to vector<4x128xf32>
    %43 = arith.mulf %41, %42 : vector<4x128xf32>
    %44 = arith.addf %17, %31 : vector<4x128xf32>
    %45 = arith.mulf %31, %31 : vector<4x128xf32>
    %46 = arith.subf %43, %45 : vector<4x128xf32>
    %cst_15 = arith.constant 9.99999974E-6 : f32
    %47 = vector.broadcast %cst_15 : f32 to vector<4x128xf32>
    %48 = arith.maximumf %46, %47 : vector<4x128xf32>
    %49 = math.rsqrt %48 : vector<4x128xf32>
    %c0_16 = arith.constant 0 : index
    %c0_17 = arith.constant 0 : index
    %50 = vector.load %arg2[%c0_16, %c0_17] : memref<1x128xf32, #tpu.memory_space<vmem>>, vector<1x128xf32>
    %51 = vector.broadcast %50 : vector<1x128xf32> to vector<4x128xf32>
    %52 = arith.mulf %49, %51 : vector<4x128xf32>
    %c0_18 = arith.constant 0 : index
    %c0_19 = arith.constant 0 : index
    %53 = vector.load %arg3[%c0_18, %c0_19] : memref<1x128xf32, #tpu.memory_space<vmem>>, vector<1x128xf32>
    %54 = arith.mulf %44, %52 : vector<4x128xf32>
    %55 = vector.broadcast %53 : vector<1x128xf32> to vector<4x128xf32>
    %56 = arith.subf %55, %54 : vector<4x128xf32>
    %57 = vector.shape_cast %52 : vector<4x128xf32> to vector<4x1x128xf32>
    %58 = vector.broadcast %57 : vector<4x1x128xf32> to vector<4x2x128xf32>
    %59 = arith.mulf %0, %58 : vector<4x2x128xf32>
    %60 = vector.shape_cast %56 : vector<4x128xf32> to vector<4x1x128xf32>
    %61 = vector.broadcast %60 : vector<4x1x128xf32> to vector<4x2x128xf32>
    %62 = arith.addf %59, %61 : vector<4x2x128xf32>
    %c0_20 = arith.constant 0 : index
    %c0_21 = arith.constant 0 : index
    %c0_22 = arith.constant 0 : index
    %63 = vector.load %arg4[%c0_20, %c0_21, %c0_22] : memref<4x2x128xf32, #tpu.memory_space<vmem>>, vector<4x2x128xf32>
    tpu.vector_store %arg4[%c0_20, %c0_21, %c0_22], %62 {strides = array<i32>} : memref<4x2x128xf32, #tpu.memory_space<vmem>>, vector<4x2x128xf32>,
    %64 = vector.shape_cast %44 : vector<4x128xf32> to vector<4x1x128xf32>
    %c0_23 = arith.constant 0 : index
    %c0_24 = arith.constant 0 : index
    %c0_25 = arith.constant 0 : index
    %65 = vector.load %arg5[%c0_23, %c0_24, %c0_25] : memref<4x1x128xf32, #tpu.memory_space<vmem>>, vector<4x1x128xf32>
    tpu.vector_store %arg5[%c0_23, %c0_24, %c0_25], %64 {strides = array<i32>} : memref<4x1x128xf32, #tpu.memory_space<vmem>>, vector<4x1x128xf32>,
    %66 = vector.shape_cast %46 : vector<4x128xf32> to vector<4x1x128xf32>
    %c0_26 = arith.constant 0 : index
    %c0_27 = arith.constant 0 : index
    %c0_28 = arith.constant 0 : index
    %67 = vector.load %arg6[%c0_26, %c0_27, %c0_28] : memref<4x1x128xf32, #tpu.memory_space<vmem>>, vector<4x1x128xf32>
    tpu.vector_store %arg6[%c0_26, %c0_27, %c0_28], %66 {strides = array<i32>} : memref<4x1x128xf32, #tpu.memory_space<vmem>>, vector<4x1x128xf32>,
    return
  }
  func.func @transform_0(%arg0: i32) -> (i32, i32, i32) {
    %c0_i32 = arith.constant 0 : i32
    %c0_i32_0 = arith.constant 0 : i32
    %c0_i32_1 = arith.constant 0 : i32
    return %arg0, %c0_i32, %c0_i32_0 : i32, i32, i32
  }
  func.func @transform_1(%arg0: i32) -> (i32, i32) {
    %c0_i32 = arith.constant 0 : i32
    %c0_i32_0 = arith.constant 0 : i32
    %c0_i32_1 = arith.constant 0 : i32
    return %c0_i32, %c0_i32_0 : i32, i32
  }
  func.func @transform_2(%arg0: i32) -> (i32, i32) {
    %c0_i32 = arith.constant 0 : i32
    %c0_i32_0 = arith.constant 0 : i32
    %c0_i32_1 = arith.constant 0 : i32
    return %c0_i32, %c0_i32_0 : i32, i32
  }
  func.func @transform_3(%arg0: i32) -> (i32, i32, i32) {
    %c0_i32 = arith.constant 0 : i32
    %c0_i32_0 = arith.constant 0 : i32
    %c0_i32_1 = arith.constant 0 : i32
    return %arg0, %c0_i32, %c0_i32_0 : i32, i32, i32
  }
  func.func @transform_4(%arg0: i32) -> (i32, i32, i32) {
    %c0_i32 = arith.constant 0 : i32
    %c0_i32_0 = arith.constant 0 : i32
    %c0_i32_1 = arith.constant 0 : i32
    return %arg0, %c0_i32, %c0_i32_0 : i32, i32, i32
  }
  func.func @transform_5(%arg0: i32) -> (i32, i32, i32) {
    %c0_i32 = arith.constant 0 : i32
    %c0_i32_0 = arith.constant 0 : i32
    %c0_i32_1 = arith.constant 0 : i32
    return %arg0, %c0_i32, %c0_i32_0 : i32, i32, i32
  }
}

</mosaic_0001>

<bundles_post_ra>
// kernel: tpu_custom_call.1
= control target key start
LH: loop header
LB: loop body
LE: loop exit
PB: predicated region body
PF: predicated region fallthrough
CT: control target
= control target key end

     0   :  { %11 = vsyncpa [#allocation3], 0  ;;  %s933_s0 = inlined_call_operand.hbm [shape: f32[4,2,128], index: 0, kind: input, shape index: {}]   ;;  %s934_s1 = inlined_call_operand.vmem [shape: f32[1,128], index: 1, kind: input, shape index: {}]   ;;  %s935_s2 = inlined_call_operand.vmem [shape: f32[1,128], index: 2, kind: input, shape index: {}]   ;;  %s936_s3 = inlined_call_operand.hbm [shape: f32[4,2,128], index: 3, kind: output, shape index: {0}]   ;;  %s937_s4 = inlined_call_operand.hbm [shape: f32[4,1,128], index: 4, kind: output, shape index: {1}]   ;;  %s938_s5 = inlined_call_operand.hbm [shape: f32[4,1,128], index: 5, kind: output, shape index: {2}]  }
   0x1   :  { %12 = vsyncpa [#allocation4], 0 }
   0x2   :  { %13 = vsyncpa [#allocation7], 0  ;;  %s715_s18 = smov [#allocation2]   ;;  %s621_s22 = scalar_lea.hbm %s933_s0, 128 }
   0x3   :  { %s19_s19 = sshll.u32 %s715_s18, 4  ;;  %p622_p0 = scmp.ne.s32.totalorder %s933_s0, %s621_s22  ;;  %s20_s19 = int_to_ptr.vmem [resolvable:$true] %s19_s19 }
   0x4   :  { %p625_p1 = scmp.lt.u32.totalorder %s621_s22, %s933_s0 }
   0x6   :  { %p627_p2 = pnand %p625_p1, %p622_p0 }
   0x8   :  { %630 = shalt.err (!%p627_p2)
}
   0x9   :  { %s631_s27 = scalar_lea.vmem %s20_s19, 128  ;;  %p636_p4 = scmp.lt.s32.totalorder %s20_s19, %s20_s19 }
   0xa   :  { %p632_p3 = scmp.ne.s32.totalorder %s20_s19, %s631_s27  ;;  %p637_p5 = scmp.lt.s32.totalorder %s631_s27, %s631_s27 }
   0xc   :  { %p638_p6 = por %p637_p5, %p636_p4 }
   0xe   :  { %p639_p7 = pnand %p638_p6, %p632_p3 }
  0x10   :  { %642 = shalt.err (!%p639_p7)
}
  0x11   :  { %s716_s28 = smov 32   ;;  %s717_s29 = smov 2  }
  0x12   :  { %25 = dma.hbm_to_vmem [thread:$0]  %s933_s0, 128, %s20_s19, [#allocation3], %s716_s28, %s716_s28, %s717_s29  }
  0x13   :  { %709 = dma.done.wait [#allocation3], 128  }
  0x14   :  { %710 = vsyncadd [#allocation3], 4294967168  ;;  %v37_v0 = vlaneseq  ;;  %vm47_vm0 = vcmask 1041409   ;;  %v771_v2 = vld [vmem:[#allocation2] sm:$0x3]  ;;  %vm50_vm1 = vcmask 1042434  }
  0x15   :  { %v773_v3 = vld [vmem:[#allocation2 + $0x2] sm:$0x3]  ;;  %v775_v4 = vld [vmem:[#allocation2 + $0x4] sm:$0x3]  ;;  %v777_v5 = vld [vmem:[#allocation2 + $0x6] sm:$0x3] }
  0x16   :  { %v38_v1 = vand.u32 127, %v37_v0  ;;  %v46_v6 = vrot.slane %v773_v3, 7  ;;  %v49_v7 = vrot.slane %v775_v4, 6  ;;  %v52_v8 = vrot.slane %v777_v5, 5  ;;  %s718_s0 = smov 8   ;;  %s719_s7 = smov 16  }
  0x17   :  { %vm53_vm2 = vcmask 1043459   ;;  %s720_s8 = smov 64   ;;  %v721_v19 = vmov 1966171168   ;;  %v74_v22 = vshrl.u32 %v37_v0, 7  ;;  %vm118_vm4 = vcmask 1041408  }
  0x18   :  { %vm39_vm3 = vcmp.lt.s32.totalorder %v38_v1, 8  ;;  %v48_v9 = vsel %vm47_vm0, %v46_v6, %v771_v2  ;;  %v71_v20 = vunpack.c.l.s4 %v721_v19  ;;  %s722_s9 = smov [#allocation6]   ;;  %s723_s11 = smov [#allocation8]  }
  0x19   :  { %v51_v10 = vsel %vm50_vm1, %v49_v7, %v48_v9  ;;  %v794_v26 = vsub.s32 0, %v74_v22  ;;  %s567_s10 = sshll.u32 %s722_s9, 4  ;;  %s579_s12 = sshll.u32 %s723_s11, 4  ;;  %s568_s10 = int_to_ptr.vmem [resolvable:$true] %s567_s10  ;;  %s858_s12 = int_to_ptr.vmem [resolvable:$true] %s579_s12 }
  0x1a   :  { %v54_v11 = vsel %vm53_vm2, %v52_v8, %v51_v10  ;;  %v72_v21 = vunpack.c.0.s8 %v71_v20  ;;  %s643_s15 = scalar_lea.vmem %s568_s10, 64  ;;  %p648_p9 = scmp.lt.s32.totalorder %s568_s10, %s568_s10 }
  0x1b   :  { %v56_v12 = vsel %vm39_vm3, %v54_v11, 0.0  ;;  %p644_p8 = scmp.ne.s32.totalorder %s568_s10, %s643_s15  ;;  %p649_p10 = scmp.lt.s32.totalorder %s643_s15, %s643_s15 }
  0x1c   :  { %57 = vrot.lane.b32.xlu0 %v56_v12, %s718_s0  ;;  %v790_v23 = vsub.s32 %v72_v21, %v74_v22 }
  0x1d   :  { %p650_p11 = por %p649_p10, %p648_p9 }
  0x1f   :  { %p651_p12 = pnand %p650_p11, %p644_p8 }
  0x8e   :  { %v58_v13 = vpop.permute.xlu0 %57 }
  0x8f   :  { %v59_v14 = vadd.f32 %v58_v13, %v56_v12 }
  0x91   :  { %60 = vrot.lane.b32.xlu0 %v59_v14, %s719_s7 }
 0x103   :  { %v61_v15 = vpop.permute.xlu0 %60 }
 0x104   :  { %v62_v16 = vadd.f32 %v61_v15, %v59_v14 }
 0x106   :  { %63 = vrot.lane.b32.xlu1 %v62_v16, %s716_s28 }
 0x178   :  { %v64_v17 = vpop.permute.xlu1 %63 }
 0x179   :  { %v65_v18 = vadd.f32 %v64_v17, %v62_v16 }
 0x17b   :  { %66 = vrot.lane.b32.xlu1 %v65_v18, %s720_s8 }
 0x1ed   :  { %v67_v24 = vpop.permute.xlu1 %66 }
 0x1ee   :  { %v792_v25 = vadd.f32 %v67_v24, %v65_v18 }
 0x1f0   :  { %v76_v27 = vrot.slane %v792_v25, %v790_v23 }
 0x1f2   :  { %v77_v28 = vcombine.high %v76_v27, %v76_v27  ;;  %v84_v29 = vrot.slane %v76_v27, %v790_v23 }
 0x1f4   :  { %v91_v30 = vrot.slane %v77_v28, %v790_v23  ;;  %v92_v31 = vcombine.high %v84_v29, %v84_v29  ;;  %v97_v32 = vrot.slane %v84_v29, %v794_v26 }
 0x1f6   :  { %v93_v33 = vcombine.high %v91_v30, %v91_v30  ;;  %v101_v34 = vrot.slane %v91_v30, %v794_v26  ;;  %v105_v35 = vrot.slane %v92_v31, %v794_v26  ;;  %v114_v36 = vsub.f32 %v771_v2, %v97_v32 }
 0x1f8   :  { %v109_v37 = vrot.slane %v93_v33, %v794_v26  ;;  %v115_v38 = vsub.f32 %v773_v3, %v101_v34  ;;  %v116_v39 = vsub.f32 %v775_v4, %v105_v35  ;;  %v119_v40 = vsel %vm118_vm4, %v114_v36, 0.0 }
 0x1f9   :  { %v120_v41 = vrot.slane %v119_v40, 4  ;;  %v248_v42 = vmul.f32 %v114_v36, %v114_v36 }
 0x1fa   :  { %v117_v43 = vsub.f32 %v777_v5, %v109_v37  ;;  %v126_v44 = vsel %vm118_vm4, %v115_v38, 0.0  ;;  %v133_v45 = vsel %vm118_vm4, %v116_v39, 0.0  ;;  %v249_v46 = vmul.f32 %v115_v38, %v115_v38 }
 0x1fb   :  { %v121_v47 = vadd.f32 %v120_v41, %v119_v40  ;;  %v127_v48 = vrot.slane %v126_v44, 4  ;;  %v134_v49 = vrot.slane %v133_v45, 4  ;;  %v250_v50 = vmul.f32 %v116_v39, %v116_v39 }
 0x1fc   :  { %v252_v51 = vsel %vm118_vm4, %v248_v42, 0.0  ;;  %v259_v52 = vsel %vm118_vm4, %v249_v46, 0.0  ;;  %v140_v53 = vsel %vm118_vm4, %v117_v43, 0.0  ;;  %v251_v54 = vmul.f32 %v117_v43, %v117_v43 }
 0x1fd   :  { %v122_v55 = vrot.slane %v121_v47, 2  ;;  %v128_v56 = vadd.f32 %v127_v48, %v126_v44  ;;  %v253_v57 = vrot.slane %v252_v51, 4  ;;  %v260_v58 = vrot.slane %v259_v52, 4 }
 0x1fe   :  { %v135_v59 = vadd.f32 %v134_v49, %v133_v45  ;;  %v141_v60 = vrot.slane %v140_v53, 4  ;;  %v266_v61 = vsel %vm118_vm4, %v250_v50, 0.0  ;;  %v273_v62 = vsel %vm118_vm4, %v251_v54, 0.0 }
 0x1ff   :  { %v254_v63 = vadd.f32 %v253_v57, %v252_v51  ;;  %v123_v0 = vadd.f32 %v122_v55, %v121_v47  ;;  %v129_v1 = vrot.slane %v128_v56, 2  ;;  %v261_v6 = vadd.f32 %v260_v58, %v259_v52 }
 0x200   :  { %v136_v7 = vrot.slane %v135_v59, 2  ;;  %v142_v8 = vadd.f32 %v141_v60, %v140_v53  ;;  %v267_v9 = vrot.slane %v266_v61, 4  ;;  %v274_v10 = vrot.slane %v273_v62, 4 }
 0x201   :  { %v124_v11 = vrot.slane %v123_v0, 1  ;;  %v130_v12 = vadd.f32 %v129_v1, %v128_v56  ;;  %v255_v13 = vrot.slane %v254_v63, 2  ;;  %v262_v14 = vrot.slane %v261_v6, 2 }
 0x202   :  { %v137_v15 = vadd.f32 %v136_v7, %v135_v59  ;;  %v143_v16 = vrot.slane %v142_v8, 2  ;;  %v268_v17 = vadd.f32 %v267_v9, %v266_v61  ;;  %v275_v18 = vadd.f32 %v274_v10, %v273_v62 }
 0x203   :  { %v131_v19 = vrot.slane %v130_v12, 1  ;;  %v256_v20 = vadd.f32 %v255_v13, %v254_v63  ;;  %v263_v21 = vadd.f32 %v262_v14, %v261_v6  ;;  %v125_v29 = vadd.f32 %v124_v11, %v123_v0 }
 0x204   :  { %v138_v22 = vrot.slane %v137_v15, 1  ;;  %v144_v24 = vadd.f32 %v143_v16, %v142_v8  ;;  %v269_v27 = vrot.slane %v268_v17, 2  ;;  %v276_v28 = vrot.slane %v275_v18, 2 }
 0x205   :  { %v132_v30 = vadd.f32 %v131_v19, %v130_v12  ;;  %v257_v31 = vrot.slane %v256_v20, 1  ;;  %v264_v32 = vrot.slane %v263_v21, 1 }
 0x206   :  { %v139_v33 = vadd.f32 %v138_v22, %v137_v15  ;;  %v145_v34 = vrot.slane %v144_v24, 1  ;;  %v270_v35 = vadd.f32 %v269_v27, %v268_v17  ;;  %v277_v36 = vadd.f32 %v276_v28, %v275_v18 }
 0x207   :  { %v151_v37 = vsel %vm47_vm0, %v132_v30, %v125_v29  ;;  %v258_v38 = vadd.f32 %v257_v31, %v256_v20  ;;  %v265_v39 = vadd.f32 %v264_v32, %v263_v21 }
 0x208   :  { %v146_v40 = vadd.f32 %v145_v34, %v144_v24  ;;  %v152_v41 = vsel %vm50_vm1, %v139_v33, %v151_v37  ;;  %v271_v42 = vrot.slane %v270_v35, 1  ;;  %v278_v43 = vrot.slane %v277_v36, 1 }
 0x209   :  { %v284_v44 = vsel %vm47_vm0, %v265_v39, %v258_v38 }
 0x20a   :  { %v153_v45 = vsel %vm53_vm2, %v146_v40, %v152_v41  ;;  %v272_v46 = vadd.f32 %v271_v42, %v270_v35  ;;  %v279_v47 = vadd.f32 %v278_v43, %v277_v36 }
 0x20b   :  { %155 = vrot.lane.b32.xlu0 %v153_v45, %s718_s0 }
 0x20c   :  { %v285_v48 = vsel %vm50_vm1, %v272_v46, %v284_v44 }
 0x20d   :  { %v286_v49 = vsel %vm53_vm2, %v279_v47, %v285_v48 }
 0x20e   :  { %288 = vrot.lane.b32.xlu1 %v286_v49, %s718_s0 }
 0x27d   :  { %v156_v50 = vpop.permute.xlu0 %155 }
 0x27e   :  { %v158_v51 = vrot.slane %v156_v50, 1  ;;  %v159_v52 = vrot.slane %v156_v50, 2  ;;  %v160_v53 = vrot.slane %v156_v50, 3  ;;  %v165_v61 = vadd.f32 %v156_v50, %v125_v29 }
 0x280   :  { %v166_v54 = vadd.f32 %v158_v51, %v132_v30  ;;  %v167_v55 = vadd.f32 %v159_v52, %v139_v33  ;;  %v168_v56 = vadd.f32 %v160_v53, %v146_v40  ;;  %v289_v57 = vpop.permute.xlu1 %288 }
 0x281   :  { %v291_v58 = vrot.slane %v289_v57, 1  ;;  %v292_v59 = vrot.slane %v289_v57, 2  ;;  %v293_v60 = vrot.slane %v289_v57, 3  ;;  %v298_v9 = vadd.f32 %v289_v57, %v258_v38 }
 0x282   :  { %v173_v62 = vrot.slane %v166_v54, 7  ;;  %v175_v63 = vrot.slane %v167_v55, 6  ;;  %v177_v8 = vrot.slane %v168_v56, 5 }
 0x283   :  { %v299_v0 = vadd.f32 %v291_v58, %v265_v39  ;;  %v300_v1 = vadd.f32 %v292_v59, %v272_v46  ;;  %v301_v6 = vadd.f32 %v293_v60, %v279_v47 }
 0x284   :  { %v174_v7 = vsel %vm47_vm0, %v173_v62, %v165_v61 }
 0x285   :  { %v306_v10 = vrot.slane %v299_v0, 7  ;;  %v176_v11 = vsel %vm50_vm1, %v175_v63, %v174_v7  ;;  %v308_v12 = vrot.slane %v300_v1, 6  ;;  %v310_v15 = vrot.slane %v301_v6, 5 }
 0x286   :  { %v178_v13 = vsel %vm53_vm2, %v177_v8, %v176_v11 }
 0x287   :  { %180 = vrot.lane.b32.xlu0 %v178_v13, %s719_s7  ;;  %v307_v14 = vsel %vm47_vm0, %v306_v10, %v298_v9 }
 0x288   :  { %v309_v16 = vsel %vm50_vm1, %v308_v12, %v307_v14 }
 0x289   :  { %v311_v17 = vsel %vm53_vm2, %v310_v15, %v309_v16 }
 0x28a   :  { %313 = vrot.lane.b32.xlu1 %v311_v17, %s719_s7 }
 0x2f9   :  { %v181_v18 = vpop.permute.xlu0 %180 }
 0x2fa   :  { %v183_v19 = vrot.slane %v181_v18, 1  ;;  %v184_v20 = vrot.slane %v181_v18, 2  ;;  %v185_v21 = vrot.slane %v181_v18, 3  ;;  %v190_v32 = vadd.f32 %v181_v18, %v165_v61 }
 0x2fc   :  { %v191_v22 = vadd.f32 %v183_v19, %v166_v54  ;;  %v192_v24 = vadd.f32 %v184_v20, %v167_v55  ;;  %v314_v27 = vpop.permute.xlu1 %313  ;;  %v193_v28 = vadd.f32 %v185_v21, %v168_v56 }
 0x2fd   :  { %v316_v29 = vrot.slane %v314_v27, 1  ;;  %v317_v30 = vrot.slane %v314_v27, 2  ;;  %v318_v31 = vrot.slane %v314_v27, 3  ;;  %v323_v40 = vadd.f32 %v314_v27, %v298_v9 }
 0x2fe   :  { %v198_v33 = vrot.slane %v191_v22, 7  ;;  %v200_v34 = vrot.slane %v192_v24, 6  ;;  %v202_v39 = vrot.slane %v193_v28, 5 }
 0x2ff   :  { %v324_v35 = vadd.f32 %v316_v29, %v299_v0  ;;  %v325_v36 = vadd.f32 %v317_v30, %v300_v1  ;;  %v326_v37 = vadd.f32 %v318_v31, %v301_v6 }
 0x300   :  { %v199_v38 = vsel %vm47_vm0, %v198_v33, %v190_v32 }
 0x301   :  { %v201_v41 = vsel %vm50_vm1, %v200_v34, %v199_v38  ;;  %v331_v42 = vrot.slane %v324_v35, 7  ;;  %v333_v43 = vrot.slane %v325_v36, 6  ;;  %v335_v46 = vrot.slane %v326_v37, 5 }
 0x302   :  { %v203_v44 = vsel %vm53_vm2, %v202_v39, %v201_v41 }
 0x303   :  { %205 = vrot.lane.b32.xlu0 %v203_v44, %s716_s28  ;;  %v332_v45 = vsel %vm47_vm0, %v331_v42, %v323_v40 }
 0x304   :  { %v334_v47 = vsel %vm50_vm1, %v333_v43, %v332_v45 }
 0x305   :  { %v336_v48 = vsel %vm53_vm2, %v335_v46, %v334_v47 }
 0x306   :  { %338 = vrot.lane.b32.xlu1 %v336_v48, %s716_s28 }
 0x375   :  { %v206_v49 = vpop.permute.xlu0 %205 }
 0x376   :  { %v208_v50 = vrot.slane %v206_v49, 1  ;;  %v209_v51 = vrot.slane %v206_v49, 2  ;;  %v210_v52 = vrot.slane %v206_v49, 3  ;;  %v215_v60 = vadd.f32 %v206_v49, %v190_v32 }
 0x378   :  { %v216_v53 = vadd.f32 %v208_v50, %v191_v22  ;;  %v217_v54 = vadd.f32 %v209_v51, %v192_v24  ;;  %v218_v55 = vadd.f32 %v210_v52, %v193_v28  ;;  %v339_v56 = vpop.permute.xlu1 %338 }
 0x379   :  { %v341_v57 = vrot.slane %v339_v56, 1  ;;  %v342_v58 = vrot.slane %v339_v56, 2  ;;  %v343_v59 = vrot.slane %v339_v56, 3  ;;  %v348_v8 = vadd.f32 %v339_v56, %v323_v40 }
 0x37a   :  { %v223_v61 = vrot.slane %v216_v53, 7  ;;  %v225_v62 = vrot.slane %v217_v54, 6  ;;  %v227_v7 = vrot.slane %v218_v55, 5 }
 0x37b   :  { %v349_v63 = vadd.f32 %v341_v57, %v324_v35  ;;  %v350_v0 = vadd.f32 %v342_v58, %v325_v36  ;;  %v351_v1 = vadd.f32 %v343_v59, %v326_v37 }
 0x37c   :  { %v224_v6 = vsel %vm47_vm0, %v223_v61, %v215_v60 }
 0x37d   :  { %v356_v9 = vrot.slane %v349_v63, 7  ;;  %v226_v10 = vsel %vm50_vm1, %v225_v62, %v224_v6  ;;  %v358_v11 = vrot.slane %v350_v0, 6  ;;  %v360_v14 = vrot.slane %v351_v1, 5 }
 0x37e   :  { %v228_v12 = vsel %vm53_vm2, %v227_v7, %v226_v10 }
 0x37f   :  { %230 = vrot.lane.b32.xlu0 %v228_v12, %s720_s8  ;;  %v357_v13 = vsel %vm47_vm0, %v356_v9, %v348_v8 }
 0x380   :  { %v359_v15 = vsel %vm50_vm1, %v358_v11, %v357_v13 }
 0x381   :  { %v361_v16 = vsel %vm53_vm2, %v360_v14, %v359_v15 }
 0x382   :  { %363 = vrot.lane.b32.xlu1 %v361_v16, %s720_s8 }
 0x3f1   :  { %v231_v17 = vpop.permute.xlu0 %230 }
 0x3f2   :  { %v233_v18 = vrot.slane %v231_v17, 1  ;;  %v234_v19 = vrot.slane %v231_v17, 2  ;;  %v235_v20 = vrot.slane %v231_v17, 3  ;;  %v240_v21 = vadd.f32 %v231_v17, %v215_v60 }
 0x3f4   :  { %v241_v22 = vadd.f32 %v233_v18, %v216_v53  ;;  %v242_v24 = vadd.f32 %v234_v19, %v217_v54  ;;  %v243_v27 = vadd.f32 %v235_v20, %v218_v55  ;;  %v244_v28 = vmul.f32 0.03125, %v240_v21  ;;  %v364_v29 = vpop.permute.xlu1 %363 }
 0x3f5   :  { %v366_v30 = vrot.slane %v364_v29, 1  ;;  %v367_v31 = vrot.slane %v364_v29, 2  ;;  %v368_v32 = vrot.slane %v364_v29, 3  ;;  %v373_v33 = vadd.f32 %v364_v29, %v348_v8  ;;  %v598_v8 = vld [vmem:[%s934_s1] ss:$0 sm:$0xff] }
 0x3f6   :  { %v245_v34 = vmul.f32 0.03125, %v241_v22  ;;  %v246_v35 = vmul.f32 0.03125, %v242_v24  ;;  %v247_v36 = vmul.f32 0.03125, %v243_v27  ;;  %v393_v37 = vmul.f32 %v244_v28, %v244_v28 }
 0x3f7   :  { %v374_v38 = vadd.f32 %v366_v30, %v349_v63  ;;  %v375_v39 = vadd.f32 %v367_v31, %v350_v0  ;;  %v376_v40 = vadd.f32 %v368_v32, %v351_v1  ;;  %v377_v41 = vmul.f32 0.03125, %v373_v33 }
 0x3f8   :  { %v385_v42 = vrot.slane %v245_v34, 7  ;;  %v387_v43 = vrot.slane %v246_v35, 6  ;;  %v394_v44 = vmul.f32 %v245_v34, %v245_v34  ;;  %v395_v45 = vmul.f32 %v246_v35, %v246_v35 }
 0x3f9   :  { %v396_v46 = vmul.f32 %v247_v36, %v247_v36  ;;  %v378_v47 = vmul.f32 0.03125, %v374_v38  ;;  %v379_v48 = vmul.f32 0.03125, %v375_v39  ;;  %v389_v50 = vrot.slane %v247_v36, 5 }
 0x3fa   :  { %v386_v49 = vsel %vm47_vm0, %v385_v42, %v244_v28  ;;  %v380_v51 = vmul.f32 0.03125, %v376_v40  ;;  %v397_v52 = vsub.f32 %v377_v41, %v393_v37 }
 0x3fb   :  { %v388_v53 = vsel %vm50_vm1, %v387_v43, %v386_v49  ;;  %v398_v54 = vsub.f32 %v378_v47, %v394_v44  ;;  %v399_v55 = vsub.f32 %v379_v48, %v395_v45 }
 0x3fc   :  { %v390_v56 = vsel %vm53_vm2, %v389_v50, %v388_v53  ;;  %v400_v57 = vsub.f32 %v380_v51, %v396_v46  ;;  %v401_v58 = vmax.f32 %v397_v52, 1e-05  ;;  %546 = vst [vmem:[#allocation8] sm:$0x1] %v397_v52 }
 0x3fd   :  { %v852_v59 = vadd.f32 %v390_v56, %v792_v25  ;;  %v402_v60 = vmax.f32 %v398_v54, 1e-05  ;;  %v403_v61 = vmax.f32 %v399_v55, 1e-05  ;;  %547 = vst [vmem:[#allocation8 + $0x1] sm:$0x1] %v398_v54 }
 0x3fe   :  { %548 = vst [vmem:[#allocation8 + $0x2] sm:$0x1] %v399_v55  ;;  %v404_v62 = vmax.f32 %v400_v57, 1e-05  ;;  %613 = vrsqrt.f32 %v401_v58  ;;  %549 = vst [vmem:[#allocation8 + $0x3] sm:$0x1] %v400_v57 }
 0x3ff   :  { %v520_v63 = vrot.slane %v852_v59, %v790_v23  ;;  %615 = vrsqrt.f32 %v402_v60 }
 0x400   :  { %617 = vrsqrt.f32 %v403_v61 }
 0x401   :  { %600 = vst.sshfl [vmem:[#allocation6] sm:$0x1 pattern:$0x73625140] %v520_v63  ;;  %619 = vrsqrt.f32 %v404_v62  ;;  %v521_v0 = vcombine.high %v520_v63, %v520_v63  ;;  %v528_v1 = vrot.slane %v520_v63, %v790_v23 }
 0x403   :  { %v535_v25 = vrot.slane %v521_v0, %v790_v23  ;;  %v536_v6 = vcombine.high %v528_v1, %v528_v1  ;;  %601 = vst.sshfl [vmem:[#allocation6 + $0x1] sm:$0x1 pattern:$0x73625140] %v521_v0 }
 0x405   :  { %v537_v7 = vcombine.high %v535_v25, %v535_v25  ;;  %544 = vst [vmem:[#allocation6 + $0x2] sm:$0x1] %v536_v6 }
 0x407   :  { %545 = vst [vmem:[#allocation6 + $0x3] sm:$0x1] %v537_v7 }
 0x408   :  { %v614_v9 = vpop.eup %613 }
 0x409   :  { %654 = shalt.err (!%p651_p12)
}
 0x40a   :  { %s655_s18 = scalar_lea.hbm %s937_s4, 64 }
 0x40b   :  { %p656_p13 = scmp.ne.s32.totalorder %s937_s4, %s655_s18  ;;  %p659_p0 = scmp.lt.u32.totalorder %s655_s18, %s937_s4 }
 0x40d   :  { %p661_p1 = pnand %p659_p0, %p656_p13 }
 0x40f   :  { %664 = shalt.err (!%p661_p1)
}
 0x410   :  { %s724_s1 = smov 1   ;;  %v616_v10 = vpop.eup %615  ;;  %s665_s25 = scalar_lea.vmem %s858_s12, 64 }
 0x411   :  { %573 = dma.vmem_to_hbm [thread:$0]  %s568_s10, 64, %s937_s4, [#allocation7], %s719_s7, %s719_s7, %s724_s1  }
 0x412   :  { %p666_p2 = scmp.ne.s32.totalorder %s858_s12, %s665_s25  ;;  %p670_p3 = scmp.lt.s32.totalorder %s858_s12, %s858_s12 }
 0x413   :  { %p671_p4 = scmp.lt.s32.totalorder %s665_s25, %s665_s25 }
 0x415   :  { %p672_p5 = por %p671_p4, %p670_p3 }
 0x417   :  { %p673_p6 = pnand %p672_p5, %p666_p2 }
 0x419   :  { %676 = shalt.err (!%p673_p6)
}
 0x41a   :  { %s677_s30 = scalar_lea.hbm %s938_s5, 64 }
 0x41b   :  { %p678_p7 = scmp.ne.s32.totalorder %s938_s5, %s677_s30  ;;  %p681_p8 = scmp.lt.u32.totalorder %s677_s30, %s938_s5 }
 0x41d   :  { %p683_p9 = pnand %p681_p8, %p678_p7 }
 0x41f   :  { %686 = shalt.err (!%p683_p9)
}
 0x420   :  { %585 = dma.vmem_to_hbm [thread:$0]  %s858_s12, 64, %s938_s5, [#allocation7], %s719_s7, %s719_s7, %s724_s1   ;;  %v618_v11 = vpop.eup %617  ;;  %v417_v12 = vmul.f32 %v616_v10, %v598_v8  ;;  %v416_v15 = vmul.f32 %v614_v9, %v598_v8 }
 0x421   :  { %v620_v13 = vpop.eup %619  ;;  %v418_v14 = vmul.f32 %v618_v11, %v598_v8  ;;  %v599_v22 = vld [vmem:[%s935_s2] ss:$0 sm:$0xff]  ;;  %s725_s2 = smov [#allocation5]  }
 0x422   :  { %v419_v16 = vmul.f32 %v620_v13, %v598_v8  ;;  %v425_v17 = vrot.slane %v417_v12, 7  ;;  %v443_v29 = vrot.slane %v416_v15, %v794_v26  ;;  %v447_v31 = vrot.slane %v417_v12, %v794_v26  ;;  %s555_s5 = sshll.u32 %s725_s2, 4  ;;  %s556_s5 = int_to_ptr.vmem [resolvable:$true] %s555_s5 }
 0x423   :  { %v427_v18 = vrot.slane %v418_v14, 6  ;;  %v451_v32 = vrot.slane %v418_v14, %v794_v26  ;;  %s687_s7 = scalar_lea.vmem %s556_s5, 128  ;;  %p692_p11 = scmp.lt.s32.totalorder %s556_s5, %s556_s5 }
 0x424   :  { %v426_v19 = vsel %vm47_vm0, %v425_v17, %v416_v15  ;;  %v429_v20 = vrot.slane %v419_v16, 5  ;;  %v456_v35 = vmul.f32 %v443_v29, %v771_v2  ;;  %v455_v36 = vrot.slane %v419_v16, %v794_v26  ;;  %p688_p10 = scmp.ne.s32.totalorder %s556_s5, %s687_s7  ;;  %p693_p12 = scmp.lt.s32.totalorder %s687_s7, %s687_s7 }
 0x425   :  { %v428_v21 = vsel %vm50_vm1, %v427_v18, %v426_v19  ;;  %v457_v40 = vmul.f32 %v447_v31, %v773_v3  ;;  %v458_v41 = vmul.f32 %v451_v32, %v775_v4 }
 0x426   :  { %v430_v24 = vsel %vm53_vm2, %v429_v20, %v428_v21  ;;  %v459_v2 = vmul.f32 %v455_v36, %v777_v5  ;;  %p694_p13 = por %p693_p12, %p692_p11 }
 0x427   :  { %v432_v27 = vmul.f32 %v430_v24, %v852_v59 }
 0x428   :  { %p695_p0 = pnand %p694_p13, %p688_p10 }
 0x429   :  { %v439_v28 = vsub.f32 %v599_v22, %v432_v27 }
 0x42b   :  { %v467_v30 = vrot.slane %v439_v28, %v790_v23 }
 0x42d   :  { %v468_v33 = vcombine.high %v467_v30, %v467_v30  ;;  %v475_v34 = vrot.slane %v467_v30, %v790_v23 }
 0x42f   :  { %v482_v37 = vrot.slane %v468_v33, %v790_v23  ;;  %v483_v38 = vcombine.high %v475_v34, %v475_v34  ;;  %v488_v39 = vrot.slane %v475_v34, %v794_v26 }
 0x431   :  { %v484_v42 = vcombine.high %v482_v37, %v482_v37  ;;  %v492_v43 = vrot.slane %v482_v37, %v794_v26  ;;  %v496_v44 = vrot.slane %v483_v38, %v794_v26  ;;  %v505_v45 = vadd.f32 %v488_v39, %v456_v35 }
 0x433   :  { %v500_v46 = vrot.slane %v484_v42, %v794_v26  ;;  %v506_v23 = vadd.f32 %v492_v43, %v457_v40  ;;  %v507_v47 = vadd.f32 %v496_v44, %v458_v41  ;;  %509 = vst [vmem:[#allocation5] sm:$0x3] %v505_v45 }
 0x435   :  { %v508_v48 = vadd.f32 %v500_v46, %v459_v2  ;;  %510 = vst [vmem:[#allocation5 + $0x2] sm:$0x3] %v506_v23  ;;  %511 = vst [vmem:[#allocation5 + $0x4] sm:$0x3] %v507_v47 }
 0x437   :  { %512 = vst [vmem:[#allocation5 + $0x6] sm:$0x3] %v508_v48 }
 0x438   :  { %698 = shalt.err (!%p695_p0)
}
 0x439   :  { %s699_s15 = scalar_lea.hbm %s936_s3, 128 }
 0x43a   :  { %p700_p1 = scmp.ne.s32.totalorder %s936_s3, %s699_s15  ;;  %p703_p2 = scmp.lt.u32.totalorder %s699_s15, %s936_s3 }
 0x43c   :  { %p705_p3 = pnand %p703_p2, %p700_p1 }
 0x43e   :  { %708 = shalt.err (!%p705_p3)
}
 0x43f   :  { %561 = dma.vmem_to_hbm [thread:$0]  %s556_s5, 128, %s936_s3, [#allocation4], %s716_s28, %s716_s28, %s717_s29  }
 0x440   :  { %711 = dma.done.wait [#allocation4], 128  }
 0x441   :  { %712 = vsyncadd [#allocation4], 4294967168 }
 0x442   :  { %713 = dma.done.wait [#allocation7], 128  }
 0x443   :  { %714 = vsyncadd [#allocation7], 4294967168 }
 0x444   :  { %595 = vsyncpa [#allocation3], 1 }
 0x445   :  { %596 = vsyncpa [#allocation4], 1 }
 0x446   :  { %597 = vsyncpa [#allocation7], 1 }

</bundles_post_ra>
